<compile_context>
chip_gen: v7x
topology: tpu7x:2x2x1
jax: 0.10.0
libtpu: 0.0.40
codegen_flags: <defaults>
</compile_context>

<pallas_src>
import functools
import math

import jax
import jax.numpy as jnp
from jax.experimental import pallas as pl
from jax.experimental.pallas import tpu as pltpu


def make_positional_encoding(d_model: int, max_len: int) -> jnp.ndarray:
    """Deterministic sinusoidal table, identical math to the PyTorch __init__."""
    assert d_model % 2 == 0, "sinusoidal encoding assumes an even d_model"
    position = jnp.arange(0, max_len, dtype=jnp.float32)[:, None]            # (L, 1)
    div_term = jnp.exp(
        jnp.arange(0, d_model, 2, dtype=jnp.float32)
        * (-(math.log(10000.0) / d_model))
    )                                                                          # (D/2,)
    enc = jnp.zeros((max_len, d_model), dtype=jnp.float32)
    enc = enc.at[:, 0::2].set(jnp.sin(position * div_term))
    enc = enc.at[:, 1::2].set(jnp.cos(position * div_term))
    return enc                                                                 # (L, D)


def _hash_u32(x, seed):
    """lowbias32-style stateless hash: uint32 -> uniform uint32 bits."""
    x = x + seed
    x = x ^ (x >> 16)
    x = x * jnp.uint32(0x7FEB352D)
    x = x ^ (x >> 15)
    x = x * jnp.uint32(0x846CA68B)
    x = x ^ (x >> 16)
    return x


def _pos_enc_kernel(seed_ref, x_ref, enc_ref, o_ref, *,
                    p: float, training: bool,
                    d_model: int, n_seq_tiles: int, tile_rows: int):
    # x_ref / enc_ref / o_ref: (tile_rows, D) VMEM tiles -- same shape, so the
    # add is a plain elementwise op (no broadcast materialization).
    y = x_ref[...] + enc_ref[...]

    if training and p > 0.0:
        s = pl.program_id(0)          # seq-tile index
        b = pl.program_id(1)          # batch index
        # Global (row, col) coordinates of this tile in the flattened (B*S, D)
        # array -> tiling-independent random stream.
        row0 = (b * n_seq_tiles + s) * tile_rows
        rows = jax.lax.broadcasted_iota(jnp.int32, y.shape, 0) + row0
        cols = jax.lax.broadcasted_iota(jnp.int32, y.shape, 1)
        idx = rows.astype(jnp.uint32) * jnp.uint32(d_model) + cols.astype(jnp.uint32)
        bits = _hash_u32(idx, seed_ref[0].astype(jnp.uint32))

        # Integer-threshold compare (no shift / int->float convert needed).
        thr = min(max(int(round(p * 4294967296.0)), 0), 4294967295)
        keep = bits >= jnp.uint32(thr)            # P(keep) = 1 - p
        scale = 1.0 / (1.0 - p)                   # inverted dropout
        y = jnp.where(keep, y * scale, jnp.zeros_like(y))

    o_ref[...] = y.astype(o_ref.dtype)


def _pick_seq_tile(S: int, D: int, itemsize: int,
                   max_tile_rows: int = 2048,
                   vmem_tile_budget: int = 36 * 1024 * 1024) -> int:
    """Largest seq tile (multiple of 8, dividing S) under the VMEM budget."""
    # Per grid step: 2 pipeline buffers x 3 arrays (x, enc, out) live in VMEM.
    rows_cap = max(8, vmem_tile_budget // (6 * D * itemsize))
    cap = min(max_tile_rows, rows_cap)
    if S <= cap or S % 8 != 0:
        return S                      # full-sequence block is always legal
    ts = (cap // 8) * 8
    while ts >= 8 and S % ts != 0:
        ts -= 8
    return ts if ts >= 8 else S


def positional_encoding_forward(x, encoding, *, p=0.1, training=False, seed=0):
    """x: (B, S, D); encoding: (max_len, D).  Returns dropout(x + enc[:S])."""
    B, S, D = x.shape
    assert encoding.shape[0] >= S and encoding.shape[1] == D

    # Glue: slice the buffer and match x's dtype (bf16 input -> bf16 add,
    # halving HBM traffic for the table).
    enc = encoding[:S, :].astype(x.dtype)
    x2 = x.reshape(B * S, D)

    itemsize = jnp.dtype(x.dtype).itemsize
    TS = _pick_seq_tile(S, D, itemsize)
    n_s = S // TS

    kernel = functools.partial(
        _pos_enc_kernel,
        p=float(p), training=bool(training),
        d_model=D, n_seq_tiles=n_s, tile_rows=TS,
    )
    seed_arr = jnp.array([seed], dtype=jnp.int32)

    out2 = pl.pallas_call(
        kernel,
        out_shape=jax.ShapeDtypeStruct((B * S, D), x.dtype),
        grid_spec=pltpu.PrefetchScalarGridSpec(
            num_scalar_prefetch=1,                 # seed lands in SMEM
            grid=(n_s, B),                         # seq tile outer, batch inner
            in_specs=[
                # x tile: rows [ (b*n_s + s)*TS , ... )
                pl.BlockSpec((TS, D), lambda s, b, seed: (b * n_s + s, 0)),
                # enc tile: depends only on s -> reused (no re-DMA) across b
                pl.BlockSpec((TS, D), lambda s, b, seed: (s, 0)),
            ],
            out_specs=pl.BlockSpec((TS, D), lambda s, b, seed: (b * n_s + s, 0)),
        ),
        compiler_params=pltpu.CompilerParams(
            dimension_semantics=("parallel", "parallel"),
            vmem_limit_bytes=48 * 1024 * 1024,
        ),
    )(seed_arr, x2, enc)

    return out2.reshape(B, S, D)


if __name__ == "__main__":
    # Module config
    d_model, max_len, dropout_p = 32, 16, 0.1
    # Input: (batch, seq, d_model)
    B, S = 2, 8

    key = jax.random.PRNGKey(0)
    x = jax.random.normal(key, (B, S, d_model), dtype=jnp.float32)

    encoding = make_positional_encoding(d_model, max_len)

    # Eval-mode forward (dropout is identity), deterministic & verifiable.
    out = positional_encoding_forward(x, encoding, p=dropout_p, training=False)
    out = jax.block_until_ready(out)
    ref = x + encoding[None, :S, :]
    assert jnp.allclose(out, ref, atol=1e-5), "eval-mode mismatch vs reference"

    # Training-mode forward (in-kernel hash dropout).  Every element must be
    # either dropped (0) or the kept value scaled by 1/(1-p).
    out_train = positional_encoding_forward(
        x, encoding, p=dropout_p, training=True, seed=123
    )
    out_train = jax.block_until_ready(out_train)
    scaled = ref / (1.0 - dropout_p)
    ok = jnp.isclose(out_train, 0.0, atol=1e-6) | jnp.isclose(out_train, scaled, atol=1e-5)
    assert bool(jnp.all(ok)), "training-mode dropout output inconsistent"

    print("KERNEL_OK")
</pallas_src>

<mosaic_0001>
module attributes {stable_mosaic.version = 11 : i64} {
  func.func @_pos_enc_kernel(%arg0: i32, %arg1: i32, %arg2: memref<1xi32, #tpu.memory_space<smem>>, %arg3: memref<8x32xf32, #tpu.memory_space<vmem>>, %arg4: memref<8x32xf32, #tpu.memory_space<vmem>>, %arg5: memref<8x32xf32, #tpu.memory_space<vmem>>) attributes {dimension_semantics = [#tpu.dimension_semantics<parallel>, #tpu.dimension_semantics<parallel>], iteration_bounds = array<i64: 1, 2>, scalar_prefetch = 1 : i64, scratch_operands = 0 : i64, tpu.core_type = #tpu.core_type<tc>, window_params = [{transform_indices = @transform_0, window_bounds = array<i64: 8, 32>}, {transform_indices = @transform_1, window_bounds = array<i64: 8, 32>}, {transform_indices = @transform_2, window_bounds = array<i64: 8, 32>}]} {
    %c0 = arith.constant 0 : index
    %c0_0 = arith.constant 0 : index
    %0 = vector.load %arg3[%c0, %c0_0] : memref<8x32xf32, #tpu.memory_space<vmem>>, vector<8x32xf32>
    %c0_1 = arith.constant 0 : index
    %c0_2 = arith.constant 0 : index
    %1 = vector.load %arg4[%c0_1, %c0_2] : memref<8x32xf32, #tpu.memory_space<vmem>>, vector<8x32xf32>
    %2 = arith.addf %0, %1 : vector<8x32xf32>
    %c0_3 = arith.constant 0 : index
    %c0_4 = arith.constant 0 : index
    %3 = vector.load %arg5[%c0_3, %c0_4] : memref<8x32xf32, #tpu.memory_space<vmem>>, vector<8x32xf32>
    tpu.vector_store %arg5[%c0_3, %c0_4], %2 {strides = array<i32>} : memref<8x32xf32, #tpu.memory_space<vmem>>, vector<8x32xf32>,
    return
  }
  func.func @transform_0(%arg0: i32, %arg1: i32, %arg2: memref<1xi32, #tpu.memory_space<smem>>) -> (i32, i32) {
    %c1_i32 = arith.constant 1 : i32
    %0 = arith.muli %arg1, %c1_i32 : i32
    %1 = arith.addi %0, %arg0 : i32
    %c0_i32 = arith.constant 0 : i32
    %c0_i32_0 = arith.constant 0 : i32
    return %1, %c0_i32 : i32, i32
  }
  func.func @transform_1(%arg0: i32, %arg1: i32, %arg2: memref<1xi32, #tpu.memory_space<smem>>) -> (i32, i32) {
    %c0_i32 = arith.constant 0 : i32
    %c0_i32_0 = arith.constant 0 : i32
    return %arg0, %c0_i32 : i32, i32
  }
  func.func @transform_2(%arg0: i32, %arg1: i32, %arg2: memref<1xi32, #tpu.memory_space<smem>>) -> (i32, i32) {
    %c1_i32 = arith.constant 1 : i32
    %0 = arith.muli %arg1, %c1_i32 : i32
    %1 = arith.addi %0, %arg0 : i32
    %c0_i32 = arith.constant 0 : i32
    %c0_i32_0 = arith.constant 0 : i32
    return %1, %c0_i32 : i32, i32
  }
}

</mosaic_0001>

<bundles_post_ra>
// kernel: tpu_custom_call.1
= control target key start
LH: loop header
LB: loop body
LE: loop exit
PB: predicated region body
PF: predicated region fallthrough
CT: control target
= control target key end

     0   :  { %9 = vsyncpa [#allocation5], 0  ;;  %s785_s0 = inlined_call_operand.<no memory space> [shape: s32[1], index: 0, kind: input, shape index: {}]   ;;  %s786_s1 = inlined_call_operand.hbm [shape: f32[16,32], index: 1, kind: input, shape index: {}]   ;;  %s787_s2 = inlined_call_operand.hbm [shape: f32[8,32], index: 2, kind: input, shape index: {}]   ;;  %s788_s3 = inlined_call_operand.hbm [shape: f32[16,32], index: 3, kind: output, shape index: {}]  }
   0x1   :  { %11 = vsyncpa [#allocation5 + $0x1], 0 }
   0x2   :  { %12 = vsyncpa [#allocation8], 0 }
   0x3   :  { %13 = vsyncpa [#allocation6], 0 }
   0x4   :  { %15 = vsyncpa [#allocation6 + $0x1], 0  ;;  %s569_s12 = smov 0   ;;  %s571_s13 = smov 0  }
   0x5   :  { %s573_s14 = smov 0   ;;  %s575_s0 = smov 0  }
   0x6   :  { %s577_s15 = smov 0   ;;  %s579_s16 = smov 0  }
   0x7 LB: > { %s312_s17 = sadd.s32 4294967295, %s544_s16   ;;  %s313_s18 = sadd.s32 4294967294, %s544_s16   ;;  %s544_s16 = sphi %s579_s16, %s21_s16   ;;  %s540_s15 = sphi %s577_s15, %s813_s15   ;;  %s536_s0 = sphi %s575_s0, %s812_s0   ;;  %s532_s14 = sphi %s573_s14, %s811_s14   ;;  %s528_s13 = sphi %s571_s13, %s810_s13   ;;  %s524_s12 = sphi %s569_s12, %s809_s12  }
   0x8   : > { %p55_p0 = scmp.ne.s32.totalorder %s528_s13, %s524_s12  ;;  %p603_p1 = scmp.eq.s32.totalorder %s312_s17, 0 }
   0x9   : > { %p607_p2 = scmp.eq.s32.totalorder %s312_s17, 1  ;;  %p113_p3 = scmp.eq.s32.totalorder %s313_s18, 1 }
   0xa   : > { %s793_s19 = scalar_select %p603_p1, 1, 0 }
   0xb   : > { %s794_s20 = scalar_select %p607_p2, 1, 0 }
   0xc   : > { %p613_p4 = por %p603_p1, %p55_p0  ;;  %p314_p5 = scmp.ge.s32.totalorder %s544_s16, 1 }
   0xd   : > { %p618_p6 = por %p113_p3, %p55_p0  ;;  %p120_p7 = scmp.lt.s32.totalorder %s544_s16, 3 }
   0xe   : > { %s795_s21 = scalar_select %p613_p4, 1, 0 }
   0xf   : > { %s796_s22 = scalar_select %p618_p6, 1, 0 }
  0x10   : > { %p623_p8 = pnand %p314_p5, %p120_p7  ;;  %s546_s24 = smov [#allocation7]  }
  0x11   : > { %s135_s25 = sshll.u32 %s546_s24, 4  ;;  %s30_s27 = sadd.s32 1, %s540_s15  ;;  %s136_s25 = int_to_ptr.vmem [resolvable:$true] %s135_s25 }
  0x12   : > { %s797_s23 = scalar_select %p623_p8, 1, 0 }
  0x13   : > { %p335_p10 = pneg %p623_p8  ;;  %s42_s28 = sadd.s32 1, %s532_s14 }
  0x14   : > { %p638_p12 = scmp.ge.s32.totalorder %s30_s27, 2  ;;  %s400_s5 = scalar_lea.hbm %s787_s2, 128 }
  0x15   : > { %p632_p11 = pnand %p335_p10, %p603_p1  ;;  %p401_p13 = scmp.ne.s32.totalorder %s787_s2, %s400_s5 }
  0x16   : > { %s799_s29 = scalar_select %p638_p12, 1, 0 }
  0x17   : > { %p402_p0 = pneg %p632_p11  ;;  %p407_p7 = scmp.lt.u32.totalorder %s400_s5, %s787_s2 }
  0x19   : > { %p403_p3 = pnand %p402_p0, %p401_p13 }
  0x1b   : > { %p404_p5 = pneg %p403_p3 }
  0x1d   : > { %p409_p10 = pnand %p407_p7, %p404_p5 }
  0x1f   : > { %412 = shalt.err (!%p409_p10)
}
  0x20   : > { %s413_s10 = scalar_lea.vmem %s136_s25, 128  ;;  %p421_p4 = scmp.lt.s32.totalorder %s136_s25, %s136_s25 }
  0x21   : > { %p414_p9 = scmp.ne.s32.totalorder %s136_s25, %s413_s10  ;;  %p422_p8 = scmp.lt.s32.totalorder %s413_s10, %s413_s10 }
  0x23   : > { %p416_p6 = pnand %p414_p9, %p402_p0  ;;  %p423_p2 = por %p422_p8, %p421_p4 }
  0x25   : > { %p417_p1 = pneg %p416_p6 }
  0x27   : > { %p424_p12 = pnand %p423_p2, %p417_p1 }
  0x29   : > { %427 = shalt.err (!%p424_p12)
}
  0x2a   : > { %338 = dma.hbm_to_vmem [thread:$0]  (!%p632_p11), %s787_s2, 128, %s136_s25, [#allocation8]  }
  0x2b   : > { %p800_p4 = scmp.ne.s32.totalorder %s799_s29, 0  ;;  %p49_p1 = scmp.ne.s32.totalorder %s532_s14, %s528_s13 }
  0x2c   : > { %p50_p2 = scmp.eq.s32.totalorder %s544_s16, 0  ;;  %p348_p6 = scmp.lt.s32.totalorder %s544_s16, 2 }
  0x2d   : > { %s815_s27 = smov (%p800_p4, %s30_s27), 0  ;;  %p801_p12 = scmp.ne.s32.totalorder %s794_s20, 0 }
  0x2e   : > { %s39_s18 = ssub.s32 %s540_s15, %s815_s27  ;;  %p51_p9 = por %p50_p2, %p49_p1 }
  0x2f   : > { %p40_p8 = scmp.eq.s32.totalorder %s39_s18, 0  ;;  %p670_p13 = por %p801_p12, %p49_p1 }
  0x30   : > { %s146_s26 = sand.u32 1, %s532_s14   ;;  %s318_s29 = sshll.u32 %s540_s15, 7 }
  0x31   : > { %s678_s30 = scalar_select %p40_p8, %s532_s14, %s42_s28  }
  0x32   : > { %s317_s25 = sshll.u32 %s146_s26, 3  ;;  %s684_s6 = scalar_lea.hbm %s786_s1, %s318_s29 }
  0x33   : > { %s150_s20 = scalar_lea.vmem [#allocation4], %s317_s25  ;;  %p688_p11 = pnand %p348_p6, %p51_p9 }
  0x34   : > { %s158_s7 = sshll.u32 %s150_s20, 4  ;;  %s147_s28 = scalar_lea.sflag [#allocation5], %s146_s26  ;;  %s686_s7 = int_to_ptr.vmem [resolvable:$true] %s158_s7 }
  0x35   : > { %s428_s9 = scalar_lea.hbm %s684_s6, 128  ;;  %p430_p3 = pneg %p688_p11 }
  0x36   : > { %p429_p0 = scmp.ne.s32.totalorder %s684_s6, %s428_s9  ;;  %s433_s17 = scalar_lea.hbm %s786_s1, 256 }
  0x37   : > { %p434_p10 = scmp.lt.u32.totalorder %s684_s6, %s786_s1  ;;  %p435_p4 = scmp.lt.u32.totalorder %s433_s17, %s428_s9 }
  0x38   : > { %p431_p5 = pnand %p430_p3, %p429_p0  ;;  %p437_p2 = scmp.lt.u32.totalorder %s428_s9, %s684_s6 }
  0x39   : > { %p436_p1 = por %p435_p4, %p434_p10 }
  0x3a   : > { %p432_p7 = pneg %p431_p5 }
  0x3b   : > { %p438_p6 = por %p437_p2, %p436_p1 }
  0x3d   : > { %p439_p8 = pnand %p438_p6, %p432_p7 }
  0x3f   : > { %442 = shalt.err (!%p439_p8)
}
  0x40   : > { %s443_s26 = scalar_lea.vmem %s686_s7, 128  ;;  %s547_s29 = smov [#allocation4]  }
  0x41   : > { %p444_p9 = scmp.ne.s32.totalorder %s686_s7, %s443_s26  ;;  %s448_s4 = sshll.u32 %s547_s29, 4  ;;  %s449_s4 = int_to_ptr.vmem [resolvable:$false] %s448_s4 }
  0x42   : > { %s450_s5 = scalar_lea.vmem %s449_s4, 256  ;;  %p451_p5 = scmp.lt.s32.totalorder %s686_s7, %s449_s4 }
  0x43   : > { %p446_p12 = pnand %p444_p9, %p430_p3  ;;  %p452_p10 = scmp.lt.s32.totalorder %s450_s5, %s443_s26 }
  0x45   : > { %p447_p0 = pneg %p446_p12  ;;  %p453_p4 = por %p452_p10, %p451_p5 }
  0x47   : > { %p454_p1 = pnand %p453_p4, %p447_p0 }
  0x49   : > { %457 = shalt.err (!%p454_p1)
}
  0x4a   : > { %342 = dma.hbm_to_vmem [thread:$0]  (!%p688_p11), %s684_s6, 128, %s686_s7, %s147_s28  }
  0x4b   : > { %p804_p7 = scmp.ne.s32.totalorder %s797_s23, 0 }
  0x4c   : > { %s720_s20 = sand.u32 (!%p804_p7), 1, %s528_s13   ;;  %p805_p3 = scmp.ne.s32.totalorder (!%p804_p7), %s795_s21, 0 }
  0x4d   : > { %167 = sbr.rel (%p804_p7) target bundleno = 113 (0x71), region = 28  ;;  %s320_s9 = sshll.u32 (!%p804_p7), %s720_s20, 3 }
  0x4e   : > { %s170_s10 = scalar_lea.sflag (!%p804_p7), [#allocation5], %s720_s20  ;;  %s173_s11 = scalar_lea.vmem (!%p804_p7), [#allocation4], %s320_s9 }
  0x54   : > { %511 = dma.done.wait (%p805_p3), %s170_s10, 128  }
  0x55   : > { %513 = vsyncadd (%p805_p3), %s170_s10, 4294967168  ;;  %p806_p2 = scmp.ne.s32.totalorder %s793_s19, 0 }
  0x57   : > { %515 = dma.done.wait (%p806_p2), [#allocation8], 128  }
  0x58   : > { %517 = vsyncadd (%p806_p2), [#allocation8], 4294967168  ;;  %s197_s23 = scalar_lea.vmem [#allocation9], %s320_s9  ;;  %s324_s7 = sshll.u32 %s536_s0, 7  ;;  %v200_v0 = vld [vmem:[%s173_s11] sm:$0xff]  ;;  %v201_v1 = vld [vmem:[#allocation7] sm:$0xff] }
  0x59   : > { %s220_s6 = sshll.u32 %s197_s23, 4  ;;  %vm203_vm0 = vcmask 261120   ;;  %v202_v2 = vadd.f32 %v201_v1, %v200_v0  ;;  %s738_s19 = scalar_lea.hbm %s788_s3, %s324_s7  ;;  %s733_s6 = int_to_ptr.vmem [resolvable:$true] %s220_s6 }
  0x5a   : > { %s206_s28 = scalar_lea.sflag [#allocation6], %s720_s20  ;;  %s458_s17 = scalar_lea.vmem %s733_s6, 128 }
  0x5b   : > { %204 = vst.msk [vmem:[%s197_s23] sm:$0xff] %vm203_vm0, %v202_v2  ;;  %p459_p11 = scmp.ne.s32.totalorder %s733_s6, %s458_s17  ;;  %s548_s0 = smov [#allocation9]  }
  0x5c   : > { %s462_s18 = sshll.u32 %s548_s0, 4  ;;  %s463_s18 = int_to_ptr.vmem [resolvable:$false] %s462_s18 }
  0x5d   : > { %p460_p6 = pnand %p459_p11, %p670_p13  ;;  %s464_s25 = scalar_lea.vmem %s463_s18, 256 }
  0x5e   : > { %p465_p9 = scmp.lt.s32.totalorder %s733_s6, %s463_s18  ;;  %p466_p12 = scmp.lt.s32.totalorder %s464_s25, %s458_s17 }
  0x5f   : > { %p461_p8 = pneg %p460_p6 }
  0x60   : > { %p467_p0 = por %p466_p12, %p465_p9 }
  0x62   : > { %p468_p5 = pnand %p467_p0, %p461_p8 }
  0x64   : > { %471 = shalt.err (!%p468_p5)
}
  0x65   : > { %s472_s26 = scalar_lea.hbm %s738_s19, 128  ;;  %s476_s5 = scalar_lea.hbm %s788_s3, 256 }
  0x66   : > { %p473_p10 = scmp.ne.s32.totalorder %s738_s19, %s472_s26  ;;  %p477_p7 = scmp.lt.u32.totalorder %s738_s19, %s788_s3 }
  0x67   : > { %p478_p3 = scmp.lt.u32.totalorder %s476_s5, %s472_s26  ;;  %p480_p11 = scmp.lt.u32.totalorder %s472_s26, %s738_s19 }
  0x68   : > { %p474_p4 = pnand %p473_p10, %p670_p13 }
  0x69   : > { %p479_p2 = por %p478_p3, %p477_p7 }
  0x6a   : > { %p475_p1 = pneg %p474_p4 }
  0x6b   : > { %p481_p6 = por %p480_p11, %p479_p2 }
  0x6d   : > { %p482_p8 = pnand %p481_p6, %p475_p1 }
  0x6f   : > { %485 = shalt.err (!%p482_p8)
}
  0x70   : > { %333 = dma.vmem_to_hbm [thread:$0]  (%p670_p13), %s733_s6, 128, %s738_s19, %s206_s28  }
  0x71 PF: > { %s232_s10 = sand.u32 1, %s524_s12   ;;  %p807_p9 = scmp.ne.s32.totalorder %s796_s22, 0 }
  0x72   : > { %p808_p12 = scmp.ge.s32.totalorder %s544_s16, 2  ;;  %s233_s11 = scalar_lea.sflag [#allocation6], %s232_s10 }
  0x74   : > { %p344_p0 = pnand %p808_p12, %p807_p9 }
  0x76   : > { %519 = dma.done.wait (!%p344_p0), %s233_s11, 128  }
  0x77   : > { %521 = vsyncadd (!%p344_p0), %s233_s11, 4294967168  ;;  %s21_s16 = sadd.s32 1, %s544_s16   ;;  %s809_s12 = smov %s528_s13 }
  0x78   : > { %p18_p5 = scmp.ge.s32.totalorder %s21_s16, 4   ;;  %s810_s13 = smov %s532_s14 }
  0x79   : > { %s811_s14 = smov %s678_s30  ;;  %s812_s0 = smov %s540_s15 }
  0x7a   : > { %s813_s15 = smov %s815_s27  ;;  %20 = sbr.rel (!%p18_p5) target bundleno = 7 (0x7), region = 78 }
  0x81   :  { %238 = vsyncpa [#allocation5], 1 }
  0x82   :  { %240 = vsyncpa [#allocation5 + $0x1], 1 }
  0x83   :  { %241 = vsyncpa [#allocation8], 1 }
  0x84   :  { %242 = vsyncpa [#allocation6], 1 }
  0x85   :  { %244 = vsyncpa [#allocation6 + $0x1], 1 }

</bundles_post_ra>
